<compile_context>
chip_gen: v5e
topology: v5e:2x2
jax: 0.10.0
libtpu: 0.0.40
codegen_flags: <defaults>
</compile_context>

<pallas_src>
import functools

import jax
import jax.numpy as jnp
import numpy as np
from jax.experimental import pallas as pl
from jax.experimental.pallas import tpu as pltpu


def _extrema1d_kernel(x_ref, o_ref, *, min_dist, valid_len, n_iters):
    # x_ref / o_ref: (TB, Lp) block = TB batch rows packed into sublanes.
    x = x_ref[...]                                   # (TB, Lp) f32
    _, Lp = x.shape

    col = jax.lax.broadcasted_iota(jnp.int32, x.shape, 1)   # int32 lane index
    in_range = col < valid_len

    # Neighbor values via lane rotation; wrap-around is killed by the boundary
    # masks below (which reproduce the F.pad(..., 0) semantics).
    x_right = pltpu.roll(x, Lp - 1, 1)               # x[i+1] at lane i
    x_left = pltpu.roll(x, 1, 1)                     # x[i-1] at lane i

    dr = jnp.where(col < valid_len - 1, x_right - x, 0.0) > 0.0   # F.pad(dx,[0,1]) > 0
    dl = jnp.where(col > 0, x - x_left, 0.0) <= 0.0               # F.pad(dx,[1,0]) <= 0
    nonpos = x <= 0.0                                # (1 - sign(x)).bool()

    valleys = dr & dl & nonpos
    peaks = (~dr) & (~dl) & (~nonpos)
    extrema = (peaks | valleys) & in_range

    # Greedy non-max suppression over |x| (equivalent to the torch sort loop).
    # All TB rows are processed in parallel: one lane-reduction per row per
    # round; the while_loop exits early once no row has a live extremum left.
    absx = jnp.abs(x)
    alive0 = jnp.where(extrema, absx, -1.0)          # -1 marks "dead"
    out0 = jnp.zeros_like(x)

    def cond(carry):
        i, go, _, _ = carry
        return jnp.logical_and(go > 0, i < n_iters)

    def body(carry):
        i, _, alive, out = carry
        m = jnp.max(alive, axis=-1, keepdims=True)              # (TB, 1)
        has = m >= 0.0                                          # row still alive?
        # First-argmax via masked int32 min over lane indices.  (argmax_p has
        # no Mosaic lowering, so the iota trick stays; indices are exact int32.)
        idx = jnp.min(jnp.where((alive == m) & has, col, Lp),
                      axis=-1, keepdims=True)                   # (TB, 1) int32
        sel = (col == idx) & has
        within = (col >= idx - min_dist) & (col <= idx + min_dist) & has
        alive = jnp.where(within, -1.0, alive)                  # suppress window
        out = jnp.where(sel, x, out)                            # keep this one
        go = (jnp.max(m) >= 0.0).astype(jnp.int32)              # early-exit flag
        return i + 1, go, alive, out

    _, _, _, out = jax.lax.while_loop(
        cond, body,
        (jnp.array(0, jnp.int32), jnp.array(1, jnp.int32), alive0, out0))
    o_ref[...] = out.astype(o_ref.dtype)


def _choose_row_tile(B, Lp):
    """Rows per block: multiple of 8 (sublanes), VMEM-safe, grid >= 2 if possible."""
    Bp8 = ((B + 7) // 8) * 8
    # ~8 live (TB, Lp) f32-sized arrays per block; keep them well under ~16 MiB
    # so the block is comfortable even under v7x's smaller VMEM.
    bytes_per_row = Lp * 4 * 8
    cap = max(8, ((16 * 1024 * 1024) // bytes_per_row) // 8 * 8)
    tb = min(64, cap, Bp8)
    if Bp8 >= 16:
        # Keep at least two grid steps so ("parallel",) can use v7x's two TCs.
        tb = min(tb, ((Bp8 // 2 + 7) // 8) * 8)
    tb = max(8, (tb // 8) * 8)
    return tb


def extrema_1d(x, minimum_extrema_distance):
    """x: (B, 1, L) float32 -> (B, 1, L): primary extrema kept, zeros elsewhere."""
    B, C, L = x.shape
    assert C == 1, "extrema_1d (like the torch reference) assumes a single channel"
    d = int(minimum_extrema_distance)

    # Lane-dense layout: pad the sequence dim to a multiple of 128 and pack
    # batch rows into the sublane dim (tb rows per grid step).
    Lp = max(128, ((L + 127) // 128) * 128)
    tb = _choose_row_tile(B, Lp)
    Bp = ((B + tb - 1) // tb) * tb

    x2 = x[:, 0, :]                                   # squeeze the channel dim
    x_p = jnp.pad(x2, ((0, Bp - B), (0, Lp - L)))     # zero rows/lanes add no extrema

    # Kept extrema are pairwise > d apart, so ceil(L/(d+1)) greedy rounds always
    # suffice; the in-kernel while_loop typically exits much earlier.
    n_iters = pl.cdiv(L, d + 1)

    kernel = functools.partial(
        _extrema1d_kernel, min_dist=d, valid_len=L, n_iters=n_iters)

    out = pl.pallas_call(
        kernel,
        out_shape=jax.ShapeDtypeStruct((Bp, Lp), x.dtype),
        grid_spec=pltpu.PrefetchScalarGridSpec(
            num_scalar_prefetch=0,
            grid=(Bp // tb,),
            in_specs=[pl.BlockSpec((tb, Lp), lambda b: (b, 0))],
            out_specs=pl.BlockSpec((tb, Lp), lambda b: (b, 0)),
        ),
        compiler_params=pltpu.CompilerParams(
            dimension_semantics=("parallel",),
        ),
    )(x_p)
    return out[:B, :L].reshape(B, 1, L)


def _extrema_1d_ref(x, d):
    """Pure numpy port of the torch reference (greedy NMS on |x|)."""
    x = np.asarray(x)
    out = np.zeros_like(x)
    dx = x[:, :, 1:] - x[:, :, :-1]
    dr = np.pad(dx, ((0, 0), (0, 0), (0, 1))) > 0
    dl = np.pad(dx, ((0, 0), (0, 0), (1, 0))) <= 0
    sgn = (1 - np.sign(x)).astype(bool)
    valleys = dr & dl & sgn
    peaks = ~dr & ~dl & ~sgn
    extrema = (peaks | valleys)[:, 0, :]
    for b in range(x.shape[0]):
        idxs = np.nonzero(extrema[b])[0]
        order = np.argsort(-np.abs(x[b, 0, idxs]), kind="stable")
        idxs_sorted = idxs[order]
        is_sec = np.zeros(idxs_sorted.shape[0], dtype=bool)
        for i, ei in enumerate(idxs_sorted):
            if not is_sec[i]:
                m = (idxs_sorted >= ei - d) & (idxs_sorted <= ei + d)
                is_sec = is_sec | m
                is_sec[i] = False
        primary = idxs_sorted[~is_sec]
        out[b, 0, primary] = x[b, 0, primary]
    return out


if __name__ == "__main__":
    key = jax.random.PRNGKey(0)

    # Case 1: small, lane-aligned sequence.
    B1, L1, d1 = 4, 256, 4
    x1 = jax.random.normal(key, (B1, 1, L1), dtype=jnp.float32)
    out1 = extrema_1d(x1, d1)
    jax.block_until_ready(out1)
    ref1 = _extrema_1d_ref(np.asarray(x1), d1)
    assert out1.shape == (B1, 1, L1)
    assert np.allclose(np.asarray(out1), ref1, atol=1e-6, rtol=1e-6)

    # Case 2: batch > 8 (multi-block grid) and non-multiple-of-128 length.
    B2, L2, d2 = 12, 200, 3
    x2 = jax.random.normal(jax.random.PRNGKey(1), (B2, 1, L2), dtype=jnp.float32)
    out2 = extrema_1d(x2, d2)
    jax.block_until_ready(out2)
    ref2 = _extrema_1d_ref(np.asarray(x2), d2)
    assert out2.shape == (B2, 1, L2)
    assert np.allclose(np.asarray(out2), ref2, atol=1e-6, rtol=1e-6)

    print("KERNEL_OK")
</pallas_src>

<mosaic_0001>
module attributes {stable_mosaic.version = 11 : i64} {
  func.func @_extrema1d_kernel(%arg0: i32, %arg1: memref<8x256xf32, #tpu.memory_space<vmem>>, %arg2: memref<8x256xf32, #tpu.memory_space<vmem>>) attributes {dimension_semantics = [#tpu.dimension_semantics<parallel>], iteration_bounds = array<i64: 1>, scalar_prefetch = 0 : i64, scratch_operands = 0 : i64, tpu.core_type = #tpu.core_type<tc>, window_params = [{transform_indices = @transform_0, window_bounds = array<i64: 8, 256>}, {transform_indices = @transform_1, window_bounds = array<i64: 8, 256>}]} {
    %c0 = arith.constant 0 : index
    %c0_0 = arith.constant 0 : index
    %0 = vector.load %arg1[%c0, %c0_0] : memref<8x256xf32, #tpu.memory_space<vmem>>, vector<8x256xf32>
    %1 = tpu.iota {dimensions = array<i32: 1>} : vector<8x256xi32>
    %c256_i32 = arith.constant 256 : i32
    %2 = vector.broadcast %c256_i32 : i32 to vector<8x256xi32>
    %3 = arith.cmpi slt, %1, %2 : vector<8x256xi32>
    %c255_i32 = arith.constant 255 : i32
    %4 = tpu.dynamic_rotate %0 by %c255_i32 dim 1 : vector<8x256xf32>, i32 -> vector<8x256xf32>
    %c1_i32 = arith.constant 1 : i32
    %5 = tpu.dynamic_rotate %0 by %c1_i32 dim 1 : vector<8x256xf32>, i32 -> vector<8x256xf32>
    %c255_i32_1 = arith.constant 255 : i32
    %6 = vector.broadcast %c255_i32_1 : i32 to vector<8x256xi32>
    %7 = arith.cmpi slt, %1, %6 : vector<8x256xi32>
    %8 = arith.subf %4, %0 : vector<8x256xf32>
    %cst = arith.constant 0.000000e+00 : f32
    %9 = vector.broadcast %cst : f32 to vector<8x256xf32>
    %10 = arith.select %7, %8, %9 : vector<8x256xi1>, vector<8x256xf32>
    %cst_2 = arith.constant 0.000000e+00 : f32
    %11 = vector.broadcast %cst_2 : f32 to vector<8x256xf32>
    %12 = arith.cmpf ogt, %10, %11 : vector<8x256xf32>
    %c0_i32 = arith.constant 0 : i32
    %13 = vector.broadcast %c0_i32 : i32 to vector<8x256xi32>
    %14 = arith.cmpi sgt, %1, %13 : vector<8x256xi32>
    %15 = arith.subf %0, %5 : vector<8x256xf32>
    %cst_3 = arith.constant 0.000000e+00 : f32
    %16 = vector.broadcast %cst_3 : f32 to vector<8x256xf32>
    %17 = arith.select %14, %15, %16 : vector<8x256xi1>, vector<8x256xf32>
    %cst_4 = arith.constant 0.000000e+00 : f32
    %18 = vector.broadcast %cst_4 : f32 to vector<8x256xf32>
    %19 = arith.cmpf ole, %17, %18 : vector<8x256xf32>
    %cst_5 = arith.constant 0.000000e+00 : f32
    %20 = vector.broadcast %cst_5 : f32 to vector<8x256xf32>
    %21 = arith.cmpf ole, %0, %20 : vector<8x256xf32>
    %22 = arith.andi %12, %19 : vector<8x256xi1>
    %23 = arith.andi %22, %21 : vector<8x256xi1>
    %cst_6 = arith.constant dense<true> : vector<8x256xi1>
    %24 = arith.xori %12, %cst_6 : vector<8x256xi1>
    %cst_7 = arith.constant dense<true> : vector<8x256xi1>
    %25 = arith.xori %19, %cst_7 : vector<8x256xi1>
    %26 = arith.andi %24, %25 : vector<8x256xi1>
    %cst_8 = arith.constant dense<true> : vector<8x256xi1>
    %27 = arith.xori %21, %cst_8 : vector<8x256xi1>
    %28 = arith.andi %26, %27 : vector<8x256xi1>
    %29 = arith.ori %28, %23 : vector<8x256xi1>
    %30 = arith.andi %29, %3 : vector<8x256xi1>
    %31 = math.absf %0 : vector<8x256xf32>
    %cst_9 = arith.constant -1.000000e+00 : f32
    %32 = vector.broadcast %cst_9 : f32 to vector<8x256xf32>
    %33 = arith.select %30, %31, %32 : vector<8x256xi1>, vector<8x256xf32>
    %cst_10 = arith.constant 0.000000e+00 : f32
    %34 = vector.broadcast %cst_10 : f32 to vector<8x256xf32>
    %c0_i32_11 = arith.constant 0 : i32
    %c1_i32_12 = arith.constant 1 : i32
    %35:4 = scf.while (%arg3 = %c0_i32_11, %arg4 = %c1_i32_12, %arg5 = %33, %arg6 = %34) : (i32, i32, vector<8x256xf32>, vector<8x256xf32>) -> (i32, i32, vector<8x256xf32>, vector<8x256xf32>) {
      %c0_i32_15 = arith.constant 0 : i32
      %37 = arith.cmpi sgt, %arg4, %c0_i32_15 : i32
      %c52_i32 = arith.constant 52 : i32
      %38 = arith.cmpi slt, %arg3, %c52_i32 : i32
      %39 = arith.andi %37, %38 : i1
      scf.condition(%39) %arg3, %arg4, %arg5, %arg6 : i32, i32, vector<8x256xf32>, vector<8x256xf32>
    } do {
    ^bb0(%arg3: i32, %arg4: i32, %arg5: vector<8x256xf32>, %arg6: vector<8x256xf32>):
      %cst_15 = arith.constant dense<0xFF800000> : vector<8xf32>
      %37 = vector.multi_reduction <maximumf>, %arg5, %cst_15 [1] : vector<8x256xf32> to vector<8xf32>
      %38 = vector.shape_cast %37 : vector<8xf32> to vector<8x1xf32>
      %cst_16 = arith.constant 0.000000e+00 : f32
      %39 = vector.broadcast %cst_16 : f32 to vector<8x1xf32>
      %40 = arith.cmpf oge, %38, %39 : vector<8x1xf32>
      %41 = vector.broadcast %38 : vector<8x1xf32> to vector<8x256xf32>
      %42 = arith.cmpf oeq, %arg5, %41 : vector<8x256xf32>
      %43 = vector.broadcast %40 : vector<8x1xi1> to vector<8x256xi1>
      %44 = arith.andi %42, %43 : vector<8x256xi1>
      %c256_i32_17 = arith.constant 256 : i32
      %45 = vector.broadcast %c256_i32_17 : i32 to vector<8x256xi32>
      %46 = arith.select %44, %1, %45 : vector<8x256xi1>, vector<8x256xi32>
      %cst_18 = arith.constant dense<2147483647> : vector<8xi32>
      %47 = vector.multi_reduction <minsi>, %46, %cst_18 [1] : vector<8x256xi32> to vector<8xi32>
      %48 = vector.shape_cast %47 : vector<8xi32> to vector<8x1xi32>
      %49 = vector.broadcast %48 : vector<8x1xi32> to vector<8x256xi32>
      %50 = arith.cmpi eq, %1, %49 : vector<8x256xi32>
      %51 = vector.broadcast %40 : vector<8x1xi1> to vector<8x256xi1>
      %52 = arith.andi %50, %51 : vector<8x256xi1>
      %c4_i32 = arith.constant 4 : i32
      %53 = vector.broadcast %c4_i32 : i32 to vector<8x1xi32>
      %54 = arith.subi %48, %53 : vector<8x1xi32>
      %55 = vector.broadcast %54 : vector<8x1xi32> to vector<8x256xi32>
      %56 = arith.cmpi sge, %1, %55 : vector<8x256xi32>
      %c4_i32_19 = arith.constant 4 : i32
      %57 = vector.broadcast %c4_i32_19 : i32 to vector<8x1xi32>
      %58 = arith.addi %48, %57 : vector<8x1xi32>
      %59 = vector.broadcast %58 : vector<8x1xi32> to vector<8x256xi32>
      %60 = arith.cmpi sle, %1, %59 : vector<8x256xi32>
      %61 = arith.andi %56, %60 : vector<8x256xi1>
      %62 = vector.broadcast %40 : vector<8x1xi1> to vector<8x256xi1>
      %63 = arith.andi %61, %62 : vector<8x256xi1>
      %cst_20 = arith.constant -1.000000e+00 : f32
      %64 = vector.broadcast %cst_20 : f32 to vector<8x256xf32>
      %65 = arith.select %63, %64, %arg5 : vector<8x256xi1>, vector<8x256xf32>
      %66 = arith.select %52, %0, %arg6 : vector<8x256xi1>, vector<8x256xf32>
      %67 = vector.shape_cast %38 : vector<8x1xf32> to vector<1x8x1xf32>
      %cst_21 = arith.constant dense<0xFF800000> : vector<1xf32>
      %68 = vector.multi_reduction <maximumf>, %67, %cst_21 [1, 2] : vector<1x8x1xf32> to vector<1xf32>
      %69 = vector.shape_cast %68 : vector<1xf32> to vector<1x1x1xf32>
      %70 = vector.extract %69[0, 0, 0] : f32 from vector<1x1x1xf32>
      %cst_22 = arith.constant 0.000000e+00 : f32
      %71 = arith.cmpf oge, %70, %cst_22 : f32
      %72 = arith.extui %71 : i1 to i32
      %c1_i32_23 = arith.constant 1 : i32
      %73 = arith.addi %arg3, %c1_i32_23 : i32
      scf.yield %73, %72, %65, %66 : i32, i32, vector<8x256xf32>, vector<8x256xf32>
    }
    %c0_13 = arith.constant 0 : index
    %c0_14 = arith.constant 0 : index
    %36 = vector.load %arg2[%c0_13, %c0_14] : memref<8x256xf32, #tpu.memory_space<vmem>>, vector<8x256xf32>
    tpu.vector_store %arg2[%c0_13, %c0_14], %35#3 {strides = array<i32>} : memref<8x256xf32, #tpu.memory_space<vmem>>, vector<8x256xf32>,
    return
  }
  func.func @transform_0(%arg0: i32) -> (i32, i32) {
    %c0_i32 = arith.constant 0 : i32
    %c0_i32_0 = arith.constant 0 : i32
    return %arg0, %c0_i32 : i32, i32
  }
  func.func @transform_1(%arg0: i32) -> (i32, i32) {
    %c0_i32 = arith.constant 0 : i32
    %c0_i32_0 = arith.constant 0 : i32
    return %arg0, %c0_i32 : i32, i32
  }
}

</mosaic_0001>

<bundles_post_ra>
// kernel: tpu_custom_call.1
= control target key start
LH: loop header
LB: loop body
LE: loop exit
PB: predicated region body
PF: predicated region fallthrough
CT: control target
= control target key end

     0   :  { %6 = vsyncpa [#allocation3], 0  ;;  %s451_s0 = inlined_call_operand.hbm [shape: f32[8,256], index: 0, kind: input, shape index: {}]   ;;  %s452_s1 = inlined_call_operand.hbm [shape: f32[8,256], index: 1, kind: output, shape index: {}]  }
   0x1   :  { %7 = vsyncpa [#allocation4], 0  ;;  %s13_s8 = sshll.u32 %s451_s0, 4  ;;  %s332_s9 = smov [#allocation2]   ;;  %s14_s8 = int_to_ptr.hbm [resolvable:$true] %s13_s8 }
   0x2   :  { %s15_s10 = sshll.u32 %s332_s9, 4  ;;  %s16_s10 = int_to_ptr.vmem [resolvable:$true] %s15_s10 }
   0x3   :  { %18 = dma.hbm_to_vmem [thread:$0]  %s14_s8, 256, %s16_s10, [#allocation3]  }
   0x4   :  { %308 = dma.done.wait [#allocation3], 256  }
   0x5   :  { %309 = vsyncadd [#allocation3], 4294967040  ;;  %v350_v0 = vld [vmem:[#allocation2] sm:$0xff]  ;;  %s333_s11 = smov 1   ;;  %s334_s12 = smov 127   ;;  %v354_v1 = vld [vmem:[#allocation2 + $0x8] sm:$0xff]  ;;  %v25_v2 = vlaneseq }
   0x6   :  { %37 = vrot.lane.b32.xlu1 %v350_v0, %s333_s11  ;;  %30 = vrot.lane.b32.xlu0 %v350_v0, %s334_s12  ;;  %vm61_vm4 = vcmp.le.f32.partialorder %v354_v1, 0.0  ;;  %vm60_vm5 = vcmp.le.f32.partialorder %v350_v0, 0.0  ;;  %vm335_vm8 = vmmov 1   ;;  %v453_v19 = vmov 0  ;;  %s403_s0 = smov 0  }
   0x7   :  { %v358_v5 = vand.u32 127, %v25_v2  ;;  %vm375_vm9 = vmxor %vm60_vm5, %vm335_vm8  ;;  %v455_v20 = vmov 0  ;;  %v80_v21 = vand.u32 2147483647, %v350_v0  ;;  %v81_v22 = vand.u32 2147483647, %v354_v1 }
   0x8   :  { %v454_v19 = vsel %vm375_vm9, 4294967295, %v453_v19  ;;  %vm73_vm12 = vmxor %vm61_vm4, %vm335_vm8  ;;  %v395_v25 = vmov 0.0   ;;  %v397_v26 = vmov 0.0  }
   0x9   :  { %v361_v6 = vadd.s32 128, %v358_v5  ;;  %vm41_vm0 = vcmp.lt.s32.totalorder %v358_v5, 1  ;;  %vm34_vm1 = vcmp.lt.s32.totalorder %v358_v5, 127  ;;  %vm52_vm2 = vcmp.gt.s32.totalorder %v358_v5, 0 }
   0xb   :  { %vm45_vm3 = vcmp.lt.s32.totalorder %v361_v6, 255 }
   0xe   :  { %39 = vrot.lane.b32.xlu1 %v354_v1, %s333_s11  ;;  %32 = vrot.lane.b32.xlu0 %v354_v1, %s334_s12 }
  0x78   :  { %v38_v3 = vpop.permute.xlu1 %37  ;;  %v31_v4 = vpop.permute.xlu0 %30 }
  0x80   :  { %v40_v7 = vpop.permute.xlu1 %39  ;;  %v33_v8 = vpop.permute.xlu0 %32 }
  0x81   :  { %v42_v9 = vsel %vm41_vm0, %v38_v3, %v40_v7  ;;  %v43_v10 = vsel %vm41_vm0, %v40_v7, %v38_v3  ;;  %v35_v11 = vsel %vm34_vm1, %v31_v4, %v33_v8  ;;  %v36_v12 = vsel %vm34_vm1, %v33_v8, %v31_v4 }
  0x82   :  { %v54_v13 = vsub.f32 %v350_v0, %v43_v10  ;;  %v55_v14 = vsub.f32 %v354_v1, %v42_v9  ;;  %v46_v15 = vsub.f32 %v35_v11, %v350_v0  ;;  %v47_v16 = vsub.f32 %v36_v12, %v354_v1 }
  0x84   :  { %v56_v17 = vsel %vm52_vm2, %v54_v13, 0.0  ;;  %vm59_vm6 = vcmp.le.f32.partialorder %v55_v14, 0.0  ;;  %v49_v18 = vsel %vm45_vm3, %v47_v16, 0.0  ;;  %vm50_vm7 = vcmp.gt.f32.partialorder %v46_v15, 0.0 }
  0x85   :  { %vm58_vm10 = vcmp.le.f32.partialorder %v56_v17, 0.0  ;;  %vm379_vm11 = vmxor %vm59_vm6, %vm335_vm8  ;;  %vm51_vm13 = vcmp.gt.f32.partialorder %v49_v18, 0.0 }
  0x86   :  { %v456_v20 = vsel %vm379_vm11, 4294967295, %v455_v20  ;;  %vm68_vm14 = vmxor %vm58_vm10, %vm335_vm8 }
  0x87   :  { %vm62_vm15 = vmand %vm50_vm7, %vm58_vm10  ;;  %vm457_vm10 = vnez %v456_v20 }
  0x88   :  { %vm63_vm0 = vmand %vm51_vm13, %vm59_vm6 }
  0x89   :  { %vm64_vm1 = vmand %vm62_vm15, %vm60_vm5  ;;  %vm458_vm5 = vnez %v454_v19 }
  0x8a   :  { %vm65_vm2 = vmand %vm63_vm0, %vm61_vm4 }
  0x8b   :  { %vm66_vm3 = vmxor %vm50_vm7, %vm335_vm8 }
  0x8c   :  { %vm67_vm9 = vmxor %vm51_vm13, %vm335_vm8 }
  0x8d   :  { %vm70_vm11 = vmand %vm66_vm3, %vm68_vm14 }
  0x8e   :  { %vm71_vm6 = vmand %vm67_vm9, %vm457_vm10 }
  0x8f   :  { %vm74_vm15 = vmand %vm70_vm11, %vm458_vm5 }
  0x90   :  { %vm75_vm0 = vmand %vm71_vm6, %vm73_vm12 }
  0x91   :  { %vm76_vm4 = vmor %vm74_vm15, %vm64_vm1 }
  0x92   :  { %vm77_vm7 = vmor %vm75_vm0, %vm65_vm2  ;;  %v82_v23 = vsel %vm76_vm4, %v80_v21, -1.0  }
  0x93   :  { %v83_v24 = vsel %vm77_vm7, %v81_v22, -1.0  }
  0x94 LB: > { %v97_v27 = vmax.f32 %v326_v23, %v322_v24  ;;  %s152_s14 = sadd.s32 1, %s330_s0   ;;  %s330_s0 = sphi %s403_s0, %s461_s0   ;;  %v326_v23 = vphi %v82_v23, %v139_v23   ;;  %v322_v24 = vphi %v83_v24, %v140_v24   ;;  %v318_v26 = vphi %v397_v26, %v460_v26   ;;  %v314_v25 = vphi %v395_v25, %v459_v25  }
  0x95   : > { %p92_p1 = scmp.lt.s32.totalorder %s152_s14, 52  ;;  %s461_s0 = smov %s152_s14 }
  0x96   : > { %98 = vmax.xlane.f32.xlu0 %v97_v27 }
 0x109   : > { %v99_v28 = vpop.xlane.xlu0 %98 }
 0x10a   : > { %vm100_vm8 = vcmp.ge.f32.partialorder %v99_v28, 0.0  ;;  %vm101_vm9 = vcmp.eq.f32.partialorder %v326_v23, %v99_v28  ;;  %vm102_vm11 = vcmp.eq.f32.partialorder %v322_v24, %v99_v28  ;;  %v143_v29 = vrot.slane %v99_v28, 4 }
 0x10b   : > { %vm105_vm12 = vmand %vm101_vm9, %vm100_vm8 }
 0x10c   : > { %vm106_vm13 = vmand %vm102_vm11, %vm100_vm8  ;;  %v107_v30 = vsel %vm105_vm12, %v358_v5, 256  ;;  %v144_v31 = vmax.f32 %v99_v28, %v143_v29 }
 0x10d   : > { %v108_v32 = vsel %vm106_vm13, %v361_v6, 256 }
 0x10e   : > { %vm109_vm14 = vcmp.lt.s32.totalorder %v107_v30, %v108_v32  ;;  %v145_v33 = vrot.slane %v144_v31, 2 }
 0x10f   : > { %v110_v34 = vsel %vm109_vm14, %v107_v30, %v108_v32 }
 0x110   : > { %v112_v35 = vshra.s32 %v110_v34, 16  ;;  %v146_v36 = vmax.f32 %v144_v31, %v145_v33  ;;  %v111_v40 = vand.u32 65535, %v110_v34 }
 0x112   : > { %v114_v37 = vcvt.s32.f32 %v112_v35  ;;  %v147_v38 = vrot.slane %v146_v36, 1  ;;  %v113_v42 = vcvt.s32.f32 %v111_v40 }
 0x114   : > { %115 = vmin.xlane.f32.xlu0 %v114_v37  ;;  %v148_v39 = vmax.f32 %v146_v36, %v147_v38 }
 0x116   : > { %193 = vpush %v148_v39 }
 0x147   : > { %s416_s13 = spop %193 }
 0x148   : > { %p150_p0 = scmp.ge.f32.partialorder %s416_s13, 0.0 }
 0x14a   : > { %p93_p2 = pnand %p150_p0, %p92_p1 }
 0x14b   :  { %s162_s17 = sshll.u32 (%p93_p2), %s452_s1, 4  ;;  %s336_s18 = smov (%p93_p2), [#allocation5]   ;;  %s163_s17 = int_to_ptr.hbm [resolvable:$true] %s162_s17 }
 0x14c   :  { %s160_s19 = sshll.u32 (%p93_p2), %s336_s18, 4  ;;  %s161_s19 = int_to_ptr.vmem [resolvable:$true] %s160_s19 }
 0x187   : > { %v116_v41 = vpop.xlane.xlu0 %115 }
 0x188   : > { %vm117_vm1 = vcmp.eq.f32.partialorder %v114_v37, %v116_v41  ;;  %v122_v44 = vcvt.f32.s32 %v116_v41 }
 0x189   : > { %v118_v43 = vsel %vm117_vm1, %v113_v42, inf }
 0x18a   : > { %119 = vmin.xlane.f32.xlu1 %v118_v43  ;;  %v123_v46 = vshll.u32 %v122_v44, 16 }
 0x1fd   : > { %v120_v45 = vpop.xlane.xlu1 %119 }
 0x1fe   : > { %v121_v47 = vcvt.f32.s32 %v120_v45 }
 0x200   : > { %v124_v48 = vadd.s32 %v123_v46, %v121_v47 }
 0x202   : > { %vm125_vm2 = vcmp.eq.s32.totalorder %v358_v5, %v124_v48  ;;  %vm126_vm3 = vcmp.eq.s32.totalorder %v361_v6, %v124_v48  ;;  %v192_v49 = vadd.s32 4294967292, %v124_v48  ;;  %v132_v50 = vadd.s32 4, %v124_v48 }
 0x203   : > { %vm127_vm10 = vmand %vm125_vm2, %vm100_vm8 }
 0x204   : > { %vm128_vm6 = vmand %vm126_vm3, %vm100_vm8  ;;  %vm130_vm5 = vcmp.ge.s32.totalorder %v358_v5, %v192_v49  ;;  %vm131_vm15 = vcmp.ge.s32.totalorder %v361_v6, %v192_v49  ;;  %vm133_vm0 = vcmp.le.s32.totalorder %v358_v5, %v132_v50  ;;  %vm134_vm4 = vcmp.le.s32.totalorder %v361_v6, %v132_v50 }
 0x205   : > { %vm135_vm7 = vmand %vm130_vm5, %vm133_vm0  ;;  %v141_v51 = vsel %vm127_vm10, %v350_v0, %v318_v26   ;;  %v142_v52 = vsel %vm128_vm6, %v354_v1, %v314_v25   ;;  %96 = sbr.rel (!%p93_p2) target bundleno = 148 (0x94), region = 35 }
 0x206   : > { %vm136_vm9 = vmand %vm131_vm15, %vm134_vm4  ;;  %v459_v25 = vmov %v142_v52  ;;  %v460_v26 = vmov %v141_v51  ;;  %153 = vst [vmem:[#allocation5] sm:$0xff] (%p93_p2), %v141_v51 }
 0x207   : > { %vm137_vm11 = vmand %vm135_vm7, %vm100_vm8  ;;  %154 = vst [vmem:[#allocation5 + $0x8] sm:$0xff] (%p93_p2), %v142_v52 }
 0x208   : > { %vm138_vm12 = vmand %vm136_vm9, %vm100_vm8  ;;  %v139_v23 = vsel %vm137_vm11, -1.0, %v326_v23   ;;  %165 = dma.vmem_to_hbm [thread:$0]  (%p93_p2), %s161_s19, 256, %s163_s17, [#allocation4]  }
 0x209   : > { %v140_v24 = vsel %vm138_vm12, -1.0, %v322_v24  }
 0x20a   :  { %310 = dma.done.wait [#allocation4], 256  }
 0x20b   :  { %311 = vsyncadd [#allocation4], 4294967040 }
 0x20c   :  { %170 = vsyncpa [#allocation3], 1 }
 0x20d   :  { %171 = vsyncpa [#allocation4], 1 }

</bundles_post_ra>
